<compile_context>
chip_gen: v5e
topology: v5e:2x2
jax: 0.10.0
libtpu: 0.0.40
codegen_flags: <defaults>
</compile_context>

<pallas_src>
import functools
import math

import numpy as np
import jax
import jax.numpy as jnp
from jax.experimental import pallas as pl

# ---------------- synthetic "config" (small shapes) ----------------
GCN_EMBEDDING_DIM = 32      # config.gcn_embedding_dim  (GCN in_dim)
GCN_HIDDENS = 16            # config.gcn_hiddens        (mem_dim = 2*hiddens = 32)
GCN_LAYERS = 2              # config.gcn_layers
LSTM_HIDDENS = 16           # dense_ner in_features = lstm_hiddens*2*2 = 64
NER_LABEL_NUM = 8
ENCODE_HIDDEN_SIZE = 32     # dense_re in_features = encode_hidden_size*2 = 64
RE_LABEL_NUM = 8
MEM_DIM = GCN_HIDDENS * 2


# ---------------- fused Pallas kernel ----------------
def _fused_gcn_classifier_kernel(num_layers,
                                 adj_ref, x_ref, valid_ref, ner_ref, p_ref, re_ref,
                                 *refs):
    """Whole forward pass for the whole batch in one invocation.

    refs = [ w0, b0, w1, b1, ...,           # GCN layer linears        (2*L)
             wout_0, ..., wout_{L-1},        # output-linear slabs      (L)
             b_out,                          # output-linear bias       (1)
             ner_wf, ner_wl, ner_b,          # NER head (split weight)  (3)
             re_wf, re_wl, re_b,             # RE head  (split weight)  (3)
             ner_out_ref, re_out_ref ]       # outputs                  (2)
    """
    n_param = 3 * num_layers + 7
    param_refs = refs[:n_param]
    ner_out_ref, re_out_ref = refs[n_param:]

    gcn_w = [param_refs[2 * l] for l in range(num_layers)]
    gcn_b = [param_refs[2 * l + 1] for l in range(num_layers)]
    w_out = [param_refs[2 * num_layers + l] for l in range(num_layers)]
    b_out = param_refs[3 * num_layers]
    ner_wf, ner_wl, ner_b = param_refs[3 * num_layers + 1: 3 * num_layers + 4]
    re_wf, re_wl, re_b = param_refs[3 * num_layers + 4: 3 * num_layers + 7]

    adj = adj_ref[...]                                   # (B, N, N)
    B, N, _ = adj.shape
    h = x_ref[...]                                       # (B, N, D_in)

    # denom = adj.sum(2).unsqueeze(2) + 1 ; hoisted approximate reciprocal (EUP).
    inv_denom = pl.reciprocal(jnp.sum(adj, axis=2, keepdims=True) + 1.0,
                              approx=True)               # (B, N, 1)

    # GCN layers. The original output Linear acts on cat(layer outputs, dim=2);
    # equivalent split-weight accumulation avoids the lane-axis concatenate.
    gcn_flat = None                                      # (B*N, mem)
    for l in range(num_layers):
        w = gcn_w[l][...]                                # (D_l, mem)
        b2 = gcn_b[l][...]                               # (1, mem)
        ax = jnp.einsum('bij,bjd->bid', adj, h,
                        preferred_element_type=jnp.float32)            # Ax = adj.bmm(h)
        # W(Ax) + W(h) == (Ax + h) @ W + 2*b   (same nn.Linear used twice)
        z = jnp.dot((ax + h).reshape(B * N, -1), w,
                    preferred_element_type=jnp.float32) + 2.0 * b2     # (B*N, mem)
        h = jnp.maximum(z.reshape(B, N, -1) * inv_denom, 0.0)          # relu(AxW/denom)
        contrib = jnp.dot(h.reshape(B * N, -1), w_out[l][...],
                          preferred_element_type=jnp.float32)
        gcn_flat = contrib if gcn_flat is None else gcn_flat + contrib
    gcn_flat = gcn_flat + b_out[...]                     # (B*N, mem)  == self.output(cat)

    # ---- NER head: cat((ner, pad_sequence(logits[:l])), dim=2) @ W_ner + b ----
    # pad_sequence zero-padding == multiply by validity mask; cat == split-weight matmuls.
    ner_part = gcn_flat * valid_ref[...]                 # (B*N, mem) * (B*N, 1)
    ner_logits = (jnp.dot(ner_ref[...], ner_wf[...], preferred_element_type=jnp.float32)
                  + jnp.dot(ner_part, ner_wl[...], preferred_element_type=jnp.float32)
                  + ner_b[...])
    ner_out_ref[...] = ner_logits.astype(ner_out_ref.dtype)

    # ---- RE head: ragged pair averaging = P @ logits_flat ; then cat((re, avg)) @ W_re + b ----
    avg = jnp.dot(p_ref[...], gcn_flat, preferred_element_type=jnp.float32)   # (P, mem)
    re_logits = (jnp.dot(re_ref[...], re_wf[...], preferred_element_type=jnp.float32)
                 + jnp.dot(avg, re_wl[...], preferred_element_type=jnp.float32)
                 + re_b[...])
    re_out_ref[...] = re_logits.astype(re_out_ref.dtype)


# ---------------- wrapper ----------------
def gcn_classifier_forward(params, inputs, ner, re_feats, adj, sent_len, re_pairs):
    B, N, _ = inputs.shape
    mem = params["gcn_out_b"].shape[0]
    num_layers = len(params["gcn_ws"])
    max_l = max(sent_len)

    # validity mask (emulates pad_sequence zero padding of the GCN logits in the NER input)
    lens = np.asarray(sent_len)
    valid = (np.arange(N)[None, :] < lens[:, None]).astype(np.float32)
    valid_flat = jnp.asarray(valid.reshape(B * N, 1))

    # NER features padded from max_l to N rows (padded rows are sliced away afterwards),
    # flattened so all head matmuls are lane/sublane tile aligned.
    ner_feat_dim = ner.shape[2]
    ner_pad = jnp.pad(ner, ((0, 0), (0, N - max_l), (0, 0)))
    ner_flat = ner_pad.reshape(B * N, ner_feat_dim)

    # RE ragged pair averaging expressed as an averaging matrix P built host-side from the
    # Python re_pairs structure; avg = P @ logits_flat is done on the MXU inside the kernel.
    rows = []
    for sid, pairs in enumerate(re_pairs):
        l = sent_len[sid]
        for head, tail in pairs:
            row = np.zeros((B * N,), np.float32)
            cnt = 0
            for i in range(head[0], head[1] + 1):
                for j in range(tail[0], tail[1] + 1):
                    row[sid * N + (i + 1) * l + j] += 1.0      # self.get_re(l, i, j)
                    cnt += 1
            rows.append(row / cnt)
    has_re = len(rows) > 0
    re_feat_dim = params["re_w"].shape[0] - mem
    if has_re:
        P = jnp.asarray(np.stack(rows))
        re_in = re_feats
    else:
        P = jnp.zeros((1, B * N), jnp.float32)                 # dummy, output discarded
        re_in = jnp.zeros((1, re_feat_dim), jnp.float32)

    # split weights (host-side) so the kernel avoids lane-axis concatenates
    w_out_slabs = [params["gcn_out_w"][l * mem:(l + 1) * mem, :] for l in range(num_layers)]
    ner_wf = params["ner_w"][:ner_feat_dim, :]
    ner_wl = params["ner_w"][ner_feat_dim:, :]
    re_wf = params["re_w"][:re_feat_dim, :]
    re_wl = params["re_w"][re_feat_dim:, :]

    args = [adj, inputs, valid_flat, ner_flat, P, re_in]
    for w, bv in zip(params["gcn_ws"], params["gcn_bs"]):
        args += [w, bv.reshape(1, -1)]
    args += w_out_slabs
    args += [params["gcn_out_b"].reshape(1, -1),
             ner_wf, ner_wl, params["ner_b"].reshape(1, -1),
             re_wf, re_wl, params["re_b"].reshape(1, -1)]

    kernel = functools.partial(_fused_gcn_classifier_kernel, num_layers)
    ner_flat_out, re_out = pl.pallas_call(
        kernel,
        out_shape=(
            jax.ShapeDtypeStruct((B * N, params["ner_b"].shape[0]), jnp.float32),
            jax.ShapeDtypeStruct((P.shape[0], params["re_b"].shape[0]), jnp.float32),
        ),
    )(*args)

    ner_logits = ner_flat_out.reshape(B, N, -1)[:, :max_l, :]
    re_logits = re_out if has_re else None
    return ner_logits, re_logits


# ---------------- pure-JAX reference (for a sanity check only) ----------------
def _reference_forward(params, inputs, ner, re_feats, adj, sent_len, re_pairs):
    denom = jnp.sum(adj, axis=2, keepdims=True) + 1.0
    h = inputs
    outs = []
    for w, b in zip(params["gcn_ws"], params["gcn_bs"]):
        ax = jnp.einsum('bij,bjd->bid', adj, h)
        axw = jnp.einsum('bnd,dm->bnm', ax, w) + b + jnp.einsum('bnd,dm->bnm', h, w) + b
        h = jax.nn.relu(axw / denom)
        outs.append(h)
    logits = jnp.einsum('bnd,dm->bnm', jnp.concatenate(outs, -1),
                        params["gcn_out_w"]) + params["gcn_out_b"]
    max_l = max(sent_len)
    lens = jnp.asarray(sent_len)
    valid = (jnp.arange(max_l)[None, :] < lens[:, None])[:, :, None]
    ner_part = jnp.where(valid, logits[:, :max_l, :], 0.0)
    ner_logits = jnp.concatenate([ner, ner_part], 2) @ params["ner_w"] + params["ner_b"]
    avg_rows = []
    for sid, pairs in enumerate(re_pairs):
        l = sent_len[sid]
        for head, tail in pairs:
            acc, cnt = 0.0, 0
            for i in range(head[0], head[1] + 1):
                for j in range(tail[0], tail[1] + 1):
                    acc = acc + logits[sid, (i + 1) * l + j]
                    cnt += 1
            avg_rows.append(acc / cnt)
    if not avg_rows:
        return ner_logits, None
    re_in = jnp.concatenate([re_feats, jnp.stack(avg_rows)], 1)
    return ner_logits, re_in @ params["re_w"] + params["re_b"]


# ---------------- deterministic parameter init (PyTorch-Linear-style uniform) ----------------
def _init_linear(kw, kb, fan_in, fan_out):
    bound = 1.0 / math.sqrt(fan_in)
    w = jax.random.uniform(kw, (fan_in, fan_out), jnp.float32, -bound, bound)  # transposed layout
    b = jax.random.uniform(kb, (fan_out,), jnp.float32, -bound, bound)
    return w, b


def init_params(key):
    ks = jax.random.split(key, 2 * GCN_LAYERS + 6)
    gcn_ws, gcn_bs = [], []
    for l in range(GCN_LAYERS):
        in_dim = GCN_EMBEDDING_DIM if l == 0 else MEM_DIM
        w, b = _init_linear(ks[2 * l], ks[2 * l + 1], in_dim, MEM_DIM)
        gcn_ws.append(w)
        gcn_bs.append(b)
    o = 2 * GCN_LAYERS
    gcn_out_w, gcn_out_b = _init_linear(ks[o], ks[o + 1], MEM_DIM * GCN_LAYERS, MEM_DIM)
    ner_w, ner_b = _init_linear(ks[o + 2], ks[o + 3], LSTM_HIDDENS * 2 * 2, NER_LABEL_NUM)
    re_w, re_b = _init_linear(ks[o + 4], ks[o + 5], ENCODE_HIDDEN_SIZE * 2, RE_LABEL_NUM)
    return dict(
        gcn_ws=gcn_ws, gcn_bs=gcn_bs, gcn_out_w=gcn_out_w, gcn_out_b=gcn_out_b,
        ner_w=ner_w, ner_b=ner_b, re_w=re_w, re_b=re_b,
    )


if __name__ == "__main__":
    key = jax.random.PRNGKey(0)
    kp, kin, kadj, kner, kre = jax.random.split(key, 5)
    params = init_params(kp)

    B, N = 2, 16
    sent_len = [3, 2]                      # N >= l*(l+1) so get_re indices stay in range
    max_l = max(sent_len)
    re_pairs = [
        [((0, 0), (1, 1)), ((0, 1), (2, 2))],   # sentence 0: two head/tail span pairs
        [((0, 0), (1, 1))],                     # sentence 1: one pair
    ]
    num_pairs = sum(len(p) for p in re_pairs)

    inputs = jax.random.normal(kin, (B, N, GCN_EMBEDDING_DIM), jnp.float32)
    adj = (jax.random.uniform(kadj, (B, N, N)) < 0.3).astype(jnp.float32)
    ner = jax.random.normal(kner, (B, max_l, LSTM_HIDDENS * 2 * 2 - MEM_DIM), jnp.float32)
    re_feats = jax.random.normal(kre, (num_pairs, ENCODE_HIDDEN_SIZE * 2 - MEM_DIM), jnp.float32)

    ner_logits, re_logits = gcn_classifier_forward(
        params, inputs, ner, re_feats, adj, sent_len, re_pairs
    )
    jax.block_until_ready(ner_logits)
    jax.block_until_ready(re_logits)
    assert ner_logits.shape == (B, max_l, NER_LABEL_NUM)
    assert re_logits.shape == (num_pairs, RE_LABEL_NUM)

    # sanity check vs. pure-JAX reference (loose tolerance: approx reciprocal in kernel)
    ner_ref, re_ref = _reference_forward(params, inputs, ner, re_feats, adj, sent_len, re_pairs)
    assert jnp.allclose(ner_logits, ner_ref, rtol=5e-2, atol=5e-2)
    assert jnp.allclose(re_logits, re_ref, rtol=5e-2, atol=5e-2)

    print("KERNEL_OK")
</pallas_src>

<mosaic_0001>
module attributes {stable_mosaic.version = 11 : i64} {
  func.func @_fused_gcn_classifier_kernel(%arg0: memref<2x16x16xf32, #tpu.memory_space<vmem>>, %arg1: memref<2x16x32xf32, #tpu.memory_space<vmem>>, %arg2: memref<32x1xf32, #tpu.memory_space<vmem>>, %arg3: memref<32x32xf32, #tpu.memory_space<vmem>>, %arg4: memref<3x32xf32, #tpu.memory_space<vmem>>, %arg5: memref<3x32xf32, #tpu.memory_space<vmem>>, %arg6: memref<32x32xf32, #tpu.memory_space<vmem>>, %arg7: memref<1x32xf32, #tpu.memory_space<vmem>>, %arg8: memref<32x32xf32, #tpu.memory_space<vmem>>, %arg9: memref<1x32xf32, #tpu.memory_space<vmem>>, %arg10: memref<32x32xf32, #tpu.memory_space<vmem>>, %arg11: memref<32x32xf32, #tpu.memory_space<vmem>>, %arg12: memref<1x32xf32, #tpu.memory_space<vmem>>, %arg13: memref<32x8xf32, #tpu.memory_space<vmem>>, %arg14: memref<32x8xf32, #tpu.memory_space<vmem>>, %arg15: memref<1x8xf32, #tpu.memory_space<vmem>>, %arg16: memref<32x8xf32, #tpu.memory_space<vmem>>, %arg17: memref<32x8xf32, #tpu.memory_space<vmem>>, %arg18: memref<1x8xf32, #tpu.memory_space<vmem>>, %arg19: memref<32x8xf32, #tpu.memory_space<vmem>>, %arg20: memref<3x8xf32, #tpu.memory_space<vmem>>) attributes {dimension_semantics = [], scalar_prefetch = 0 : i64, scratch_operands = 0 : i64, tpu.core_type = #tpu.core_type<tc>} {
    %c0 = arith.constant 0 : index
    %c0_0 = arith.constant 0 : index
    %c0_1 = arith.constant 0 : index
    %0 = vector.load %arg0[%c0, %c0_0, %c0_1] : memref<2x16x16xf32, #tpu.memory_space<vmem>>, vector<2x16x16xf32>
    %c0_2 = arith.constant 0 : index
    %c0_3 = arith.constant 0 : index
    %c0_4 = arith.constant 0 : index
    %1 = vector.load %arg1[%c0_2, %c0_3, %c0_4] : memref<2x16x32xf32, #tpu.memory_space<vmem>>, vector<2x16x32xf32>
    %cst = arith.constant dense<0.000000e+00> : vector<2x16xf32>
    %2 = vector.multi_reduction <add>, %0, %cst [2] : vector<2x16x16xf32> to vector<2x16xf32>
    %3 = vector.shape_cast %2 : vector<2x16xf32> to vector<2x16x1xf32>
    %cst_5 = arith.constant 1.000000e+00 : f32
    %4 = vector.broadcast %cst_5 : f32 to vector<2x16x1xf32>
    %5 = arith.addf %3, %4 : vector<2x16x1xf32>
    %6 = tpu.reciprocal %5 {approx = true} : vector<2x16x1xf32> -> vector<2x16x1xf32>
    %c0_6 = arith.constant 0 : index
    %c0_7 = arith.constant 0 : index
    %7 = vector.load %arg6[%c0_6, %c0_7] : memref<32x32xf32, #tpu.memory_space<vmem>>, vector<32x32xf32>
    %c0_8 = arith.constant 0 : index
    %c0_9 = arith.constant 0 : index
    %8 = vector.load %arg7[%c0_8, %c0_9] : memref<1x32xf32, #tpu.memory_space<vmem>>, vector<1x32xf32>
    "tpu.trace_start"() <{level = 10 : i32, message = "bij,bjd->bid"}> : () -> ()
    %cst_10 = arith.constant dense<0.000000e+00> : vector<2x16x32xf32>
    %9 = tpu.matmul %0, %1, %cst_10 {dimension_numbers = #tpu.dot_dimension_numbers<[2], [1], [1], [2], [0, 0, 0, 1, 1, 2], [0], [0]>} : vector<2x16x16xf32>, vector<2x16x32xf32>, vector<2x16x32xf32> -> vector<2x16x32xf32>
    "tpu.trace_stop"() : () -> ()
    %10 = arith.addf %9, %1 : vector<2x16x32xf32>
    %11 = vector.shape_cast %10 : vector<2x16x32xf32> to vector<32x32xf32>
    %cst_11 = arith.constant dense<0.000000e+00> : vector<32x32xf32>
    %12 = tpu.matmul %11, %7, %cst_11 {dimension_numbers = #tpu.dot_dimension_numbers<[1], [0], [0], [1], [0, 0, 1, 1], [], []>} : vector<32x32xf32>, vector<32x32xf32>, vector<32x32xf32> -> vector<32x32xf32>
    %cst_12 = arith.constant 2.000000e+00 : f32
    %13 = vector.broadcast %cst_12 : f32 to vector<1x32xf32>
    %14 = arith.mulf %13, %8 : vector<1x32xf32>
    %15 = vector.broadcast %14 : vector<1x32xf32> to vector<32x32xf32>
    %16 = arith.addf %12, %15 : vector<32x32xf32>
    %17 = vector.shape_cast %16 : vector<32x32xf32> to vector<2x16x32xf32>
    %18 = vector.broadcast %6 : vector<2x16x1xf32> to vector<2x16x32xf32>
    %19 = arith.mulf %17, %18 : vector<2x16x32xf32>
    %cst_13 = arith.constant 0.000000e+00 : f32
    %20 = vector.broadcast %cst_13 : f32 to vector<2x16x32xf32>
    %21 = arith.maximumf %19, %20 : vector<2x16x32xf32>
    %22 = vector.shape_cast %21 : vector<2x16x32xf32> to vector<32x32xf32>
    %c0_14 = arith.constant 0 : index
    %c0_15 = arith.constant 0 : index
    %23 = vector.load %arg10[%c0_14, %c0_15] : memref<32x32xf32, #tpu.memory_space<vmem>>, vector<32x32xf32>
    %cst_16 = arith.constant dense<0.000000e+00> : vector<32x32xf32>
    %24 = tpu.matmul %22, %23, %cst_16 {dimension_numbers = #tpu.dot_dimension_numbers<[1], [0], [0], [1], [0, 0, 1, 1], [], []>} : vector<32x32xf32>, vector<32x32xf32>, vector<32x32xf32> -> vector<32x32xf32>
    %c0_17 = arith.constant 0 : index
    %c0_18 = arith.constant 0 : index
    %25 = vector.load %arg8[%c0_17, %c0_18] : memref<32x32xf32, #tpu.memory_space<vmem>>, vector<32x32xf32>
    %c0_19 = arith.constant 0 : index
    %c0_20 = arith.constant 0 : index
    %26 = vector.load %arg9[%c0_19, %c0_20] : memref<1x32xf32, #tpu.memory_space<vmem>>, vector<1x32xf32>
    "tpu.trace_start"() <{level = 10 : i32, message = "bij,bjd->bid"}> : () -> ()
    %cst_21 = arith.constant dense<0.000000e+00> : vector<2x16x32xf32>
    %27 = tpu.matmul %0, %21, %cst_21 {dimension_numbers = #tpu.dot_dimension_numbers<[2], [1], [1], [2], [0, 0, 0, 1, 1, 2], [0], [0]>} : vector<2x16x16xf32>, vector<2x16x32xf32>, vector<2x16x32xf32> -> vector<2x16x32xf32>
    "tpu.trace_stop"() : () -> ()
    %28 = arith.addf %27, %21 : vector<2x16x32xf32>
    %29 = vector.shape_cast %28 : vector<2x16x32xf32> to vector<32x32xf32>
    %cst_22 = arith.constant dense<0.000000e+00> : vector<32x32xf32>
    %30 = tpu.matmul %29, %25, %cst_22 {dimension_numbers = #tpu.dot_dimension_numbers<[1], [0], [0], [1], [0, 0, 1, 1], [], []>} : vector<32x32xf32>, vector<32x32xf32>, vector<32x32xf32> -> vector<32x32xf32>
    %cst_23 = arith.constant 2.000000e+00 : f32
    %31 = vector.broadcast %cst_23 : f32 to vector<1x32xf32>
    %32 = arith.mulf %31, %26 : vector<1x32xf32>
    %33 = vector.broadcast %32 : vector<1x32xf32> to vector<32x32xf32>
    %34 = arith.addf %30, %33 : vector<32x32xf32>
    %35 = vector.shape_cast %34 : vector<32x32xf32> to vector<2x16x32xf32>
    %36 = vector.broadcast %6 : vector<2x16x1xf32> to vector<2x16x32xf32>
    %37 = arith.mulf %35, %36 : vector<2x16x32xf32>
    %cst_24 = arith.constant 0.000000e+00 : f32
    %38 = vector.broadcast %cst_24 : f32 to vector<2x16x32xf32>
    %39 = arith.maximumf %37, %38 : vector<2x16x32xf32>
    %40 = vector.shape_cast %39 : vector<2x16x32xf32> to vector<32x32xf32>
    %c0_25 = arith.constant 0 : index
    %c0_26 = arith.constant 0 : index
    %41 = vector.load %arg11[%c0_25, %c0_26] : memref<32x32xf32, #tpu.memory_space<vmem>>, vector<32x32xf32>
    %cst_27 = arith.constant dense<0.000000e+00> : vector<32x32xf32>
    %42 = tpu.matmul %40, %41, %cst_27 {dimension_numbers = #tpu.dot_dimension_numbers<[1], [0], [0], [1], [0, 0, 1, 1], [], []>} : vector<32x32xf32>, vector<32x32xf32>, vector<32x32xf32> -> vector<32x32xf32>
    %43 = arith.addf %24, %42 : vector<32x32xf32>
    %c0_28 = arith.constant 0 : index
    %c0_29 = arith.constant 0 : index
    %44 = vector.load %arg12[%c0_28, %c0_29] : memref<1x32xf32, #tpu.memory_space<vmem>>, vector<1x32xf32>
    %45 = vector.broadcast %44 : vector<1x32xf32> to vector<32x32xf32>
    %46 = arith.addf %43, %45 : vector<32x32xf32>
    %c0_30 = arith.constant 0 : index
    %c0_31 = arith.constant 0 : index
    %47 = vector.load %arg2[%c0_30, %c0_31] : memref<32x1xf32, #tpu.memory_space<vmem>>, vector<32x1xf32>
    %48 = vector.broadcast %47 : vector<32x1xf32> to vector<32x32xf32>
    %49 = arith.mulf %46, %48 : vector<32x32xf32>
    %c0_32 = arith.constant 0 : index
    %c0_33 = arith.constant 0 : index
    %50 = vector.load %arg3[%c0_32, %c0_33] : memref<32x32xf32, #tpu.memory_space<vmem>>, vector<32x32xf32>
    %c0_34 = arith.constant 0 : index
    %c0_35 = arith.constant 0 : index
    %51 = vector.load %arg13[%c0_34, %c0_35] : memref<32x8xf32, #tpu.memory_space<vmem>>, vector<32x8xf32>
    %cst_36 = arith.constant dense<0.000000e+00> : vector<32x8xf32>
    %52 = tpu.matmul %50, %51, %cst_36 {dimension_numbers = #tpu.dot_dimension_numbers<[1], [0], [0], [1], [0, 0, 1, 1], [], []>} : vector<32x32xf32>, vector<32x8xf32>, vector<32x8xf32> -> vector<32x8xf32>
    %c0_37 = arith.constant 0 : index
    %c0_38 = arith.constant 0 : index
    %53 = vector.load %arg14[%c0_37, %c0_38] : memref<32x8xf32, #tpu.memory_space<vmem>>, vector<32x8xf32>
    %cst_39 = arith.constant dense<0.000000e+00> : vector<32x8xf32>
    %54 = tpu.matmul %49, %53, %cst_39 {dimension_numbers = #tpu.dot_dimension_numbers<[1], [0], [0], [1], [0, 0, 1, 1], [], []>} : vector<32x32xf32>, vector<32x8xf32>, vector<32x8xf32> -> vector<32x8xf32>
    %55 = arith.addf %52, %54 : vector<32x8xf32>
    %c0_40 = arith.constant 0 : index
    %c0_41 = arith.constant 0 : index
    %56 = vector.load %arg15[%c0_40, %c0_41] : memref<1x8xf32, #tpu.memory_space<vmem>>, vector<1x8xf32>
    %57 = vector.broadcast %56 : vector<1x8xf32> to vector<32x8xf32>
    %58 = arith.addf %55, %57 : vector<32x8xf32>
    %c0_42 = arith.constant 0 : index
    %c0_43 = arith.constant 0 : index
    %59 = vector.load %arg19[%c0_42, %c0_43] : memref<32x8xf32, #tpu.memory_space<vmem>>, vector<32x8xf32>
    tpu.vector_store %arg19[%c0_42, %c0_43], %58 {strides = array<i32>} : memref<32x8xf32, #tpu.memory_space<vmem>>, vector<32x8xf32>,
    %c0_44 = arith.constant 0 : index
    %c0_45 = arith.constant 0 : index
    %60 = vector.load %arg4[%c0_44, %c0_45] : memref<3x32xf32, #tpu.memory_space<vmem>>, vector<3x32xf32>
    %cst_46 = arith.constant dense<0.000000e+00> : vector<3x32xf32>
    %61 = tpu.matmul %60, %46, %cst_46 {dimension_numbers = #tpu.dot_dimension_numbers<[1], [0], [0], [1], [0, 0, 1, 1], [], []>} : vector<3x32xf32>, vector<32x32xf32>, vector<3x32xf32> -> vector<3x32xf32>
    %c0_47 = arith.constant 0 : index
    %c0_48 = arith.constant 0 : index
    %62 = vector.load %arg5[%c0_47, %c0_48] : memref<3x32xf32, #tpu.memory_space<vmem>>, vector<3x32xf32>
    %c0_49 = arith.constant 0 : index
    %c0_50 = arith.constant 0 : index
    %63 = vector.load %arg16[%c0_49, %c0_50] : memref<32x8xf32, #tpu.memory_space<vmem>>, vector<32x8xf32>
    %cst_51 = arith.constant dense<0.000000e+00> : vector<3x8xf32>
    %64 = tpu.matmul %62, %63, %cst_51 {dimension_numbers = #tpu.dot_dimension_numbers<[1], [0], [0], [1], [0, 0, 1, 1], [], []>} : vector<3x32xf32>, vector<32x8xf32>, vector<3x8xf32> -> vector<3x8xf32>
    %c0_52 = arith.constant 0 : index
    %c0_53 = arith.constant 0 : index
    %65 = vector.load %arg17[%c0_52, %c0_53] : memref<32x8xf32, #tpu.memory_space<vmem>>, vector<32x8xf32>
    %cst_54 = arith.constant dense<0.000000e+00> : vector<3x8xf32>
    %66 = tpu.matmul %61, %65, %cst_54 {dimension_numbers = #tpu.dot_dimension_numbers<[1], [0], [0], [1], [0, 0, 1, 1], [], []>} : vector<3x32xf32>, vector<32x8xf32>, vector<3x8xf32> -> vector<3x8xf32>
    %67 = arith.addf %64, %66 : vector<3x8xf32>
    %c0_55 = arith.constant 0 : index
    %c0_56 = arith.constant 0 : index
    %68 = vector.load %arg18[%c0_55, %c0_56] : memref<1x8xf32, #tpu.memory_space<vmem>>, vector<1x8xf32>
    %69 = vector.broadcast %68 : vector<1x8xf32> to vector<3x8xf32>
    %70 = arith.addf %67, %69 : vector<3x8xf32>
    %c0_57 = arith.constant 0 : index
    %c0_58 = arith.constant 0 : index
    %71 = vector.load %arg20[%c0_57, %c0_58] : memref<3x8xf32, #tpu.memory_space<vmem>>, vector<3x8xf32>
    tpu.vector_store %arg20[%c0_57, %c0_58], %70 {strides = array<i32>} : memref<3x8xf32, #tpu.memory_space<vmem>>, vector<3x8xf32>,
    return
  }
}

</mosaic_0001>

<bundles_post_ra>
// kernel: tpu_custom_call.1
= control target key start
LH: loop header
LB: loop body
LE: loop exit
PB: predicated region body
PF: predicated region fallthrough
CT: control target
= control target key end

     0   :  { %s1252_s0 = inlined_call_operand.vmem [shape: f32[2,16,16], index: 0, kind: input, shape index: {}]   ;;  %s1253_s1 = inlined_call_operand.vmem [shape: f32[2,16,32], index: 1, kind: input, shape index: {}]   ;;  %s1254_s2 = inlined_call_operand.vmem [shape: f32[32,1], index: 2, kind: input, shape index: {}]   ;;  %s1255_s3 = inlined_call_operand.vmem [shape: f32[32,32], index: 3, kind: input, shape index: {}]   ;;  %s1256_s4 = inlined_call_operand.hbm [shape: f32[3,32], index: 4, kind: input, shape index: {}]   ;;  %s1257_s5 = inlined_call_operand.hbm [shape: f32[3,32], index: 5, kind: input, shape index: {}]   ;;  %s1258_s6 = inlined_call_operand.vmem [shape: f32[32,32], index: 6, kind: input, shape index: {}]   ;;  %s1259_s7 = inlined_call_operand.vmem [shape: f32[1,32], index: 7, kind: input, shape index: {}]   ;;  %s1260_s8 = inlined_call_operand.vmem [shape: f32[32,32], index: 8, kind: input, shape index: {}]   ;;  %s1261_s9 = inlined_call_operand.vmem [shape: f32[1,32], index: 9, kind: input, shape index: {}]   ;;  %s1262_s10 = inlined_call_operand.hbm [shape: f32[32,32], index: 10, kind: input, shape index: {}]   ;;  %s1263_s11 = inlined_call_operand.hbm [shape: f32[32,32], index: 11, kind: input, shape index: {}]   ;;  %s1264_s12 = inlined_call_operand.vmem [shape: f32[1,32], index: 12, kind: input, shape index: {}]   ;;  %s1265_s13 = inlined_call_operand.vmem [shape: f32[32,8], index: 13, kind: input, shape index: {}]   ;;  %s1266_s14 = inlined_call_operand.vmem [shape: f32[32,8], index: 14, kind: input, shape index: {}]   ;;  %s1267_s15 = inlined_call_operand.vmem [shape: f32[1,8], index: 15, kind: input, shape index: {}]   ;;  %s1268_s16 = inlined_call_operand.vmem [shape: f32[32,8], index: 16, kind: input, shape index: {}]   ;;  %s1269_s17 = inlined_call_operand.vmem [shape: f32[32,8], index: 17, kind: input, shape index: {}]   ;;  %s1270_s18 = inlined_call_operand.vmem [shape: f32[1,8], index: 18, kind: input, shape index: {}]   ;;  %s1271_s19 = inlined_call_operand.vmem [shape: f32[32,8], index: 19, kind: output, shape index: {0}]   ;;  %s1272_s20 = inlined_call_operand.hbm [shape: f32[3,8], index: 20, kind: output, shape index: {1}]  }
   0x1   :  { %1277 = sst [smem:[#allocation15_spill]] %s1252_s0 }
   0x2   :  { %1278 = sst [smem:[#allocation16_spill]] %s1253_s1 }
   0x3   :  { %1279 = sst [smem:[#allocation17_spill]] %s1254_s2 }
   0x4   :  { %1280 = sst [smem:[#allocation18_spill]] %s1255_s3 }
   0x5   :  { %1281 = sst [smem:[#allocation19_spill]] %s1256_s4 }
   0x6   :  { %26 = vsyncpa [#allocation3], 0 }
   0x7   :  { %27 = vsyncpa [#allocation6], 0 }
   0x8   :  { %28 = vsyncpa [#allocation9], 0  ;;  %s54_s23 = sshll.u32 %s1257_s5, 4  ;;  %s55_s23 = int_to_ptr.hbm [resolvable:$true] %s54_s23 }
   0x9   :  { %29 = vsyncpa [#allocation4], 0  ;;  %s903_s24 = smov [#allocation5]   ;;  %s1282_s26 = sld [smem:[#allocation19_spill]] }
   0xa   :  { %s56_s2 = sshll.u32 %s903_s24, 4  ;;  %s904_s28 = smov [#allocation2]   ;;  %s57_s2 = int_to_ptr.vmem [resolvable:$true] %s56_s2 }
   0xb   :  { %59 = dma.hbm_to_vmem [thread:$0]  %s55_s23, 64, %s57_s2, [#allocation6]  }
   0xc   :  { %s45_s4 = sshll.u32 %s904_s28, 4  ;;  %s72_s0 = sshll.u32 %s1262_s10, 4  ;;  %s46_s4 = int_to_ptr.vmem [resolvable:$true] %s45_s4  ;;  %s73_s0 = int_to_ptr.hbm [resolvable:$true] %s72_s0 }
   0xd   :  { %s905_s5 = smov [#allocation7]   ;;  %s85_s24 = sshll.u32 %s1263_s11, 4  ;;  %s86_s24 = int_to_ptr.hbm [resolvable:$true] %s85_s24 }
   0xe   :  { %s74_s21 = sshll.u32 %s905_s5, 4  ;;  %s906_s25 = smov 128   ;;  %s75_s21 = int_to_ptr.vmem [resolvable:$true] %s74_s21 }
   0xf   :  { %s43_s27 = sshll.u32 %s1282_s26, 4  ;;  %s907_s3 = smov 8   ;;  %s44_s27 = int_to_ptr.hbm [resolvable:$true] %s43_s27 }
  0x10   :  { %48 = dma.hbm_to_vmem [thread:$0]  %s44_s27, 64, %s46_s4, [#allocation3]  }
  0x11   :  { %80 = dma.hbm_to_vmem [thread:$0]  %s73_s0, 512, %s75_s21, [#allocation6], %s906_s25, %s906_s25, %s907_s3  }
  0x12   :  { %s908_s23 = smov [#allocation8]  }
  0x13   :  { %s87_s2 = sshll.u32 %s908_s23, 4  ;;  %s88_s2 = int_to_ptr.vmem [resolvable:$true] %s87_s2 }
  0x14   :  { %93 = dma.hbm_to_vmem [thread:$0]  %s86_s24, 512, %s88_s2, [#allocation9], %s906_s25, %s906_s25, %s907_s3  }
  0x15   :  { %895 = dma.done.wait [#allocation3], 64  }
  0x16   :  { %896 = vsyncadd [#allocation3], 4294967232 }
  0x17   :  { %897 = dma.done.wait [#allocation6], 576  }
  0x18   :  { %898 = vsyncadd [#allocation6], 4294966720 }
  0x19   :  { %899 = dma.done.wait [#allocation9], 512  }
  0x1a   :  { %900 = vsyncadd [#allocation9], 4294966784  ;;  %s1283_s27 = sld [smem:[#allocation16_spill]]  ;;  %vm132_vm0 = vcmask 130048   ;;  %v156_v7 = vld [vmem:[%s1258_s6 + $0x18] sm:$0xff]  ;;  %v155_v8 = vld [vmem:[%s1258_s6 + $0x10] sm:$0xff] }
  0x1b   :  { %s1284_s30 = sld [smem:[#allocation15_spill]]  ;;  %245 = vmatpush.msra.mxu2 %v156_v7  ;;  %v154_v10 = vld [vmem:[%s1258_s6 + $0x8] sm:$0xff]  ;;  %v153_v11 = vld [vmem:[%s1258_s6] sm:$0xff]  ;;  %vm220_vm1 = vcmask 261120   ;;  %v272_v56 = vld [vmem:[#allocation7 + $0x10] sm:$0xff]  ;;  %vm602_vm2 = vcmask 64512  }
  0x1c   :  { %v157_v26 = vld [vmem:[%s1259_s7] sm:$0x1]  ;;  %v271_v57 = vld [vmem:[#allocation7 + $0x8] sm:$0xff]  ;;  %v270_v58 = vld [vmem:[#allocation7] sm:$0xff]  ;;  %s1285_s26 = sld [smem:[#allocation17_spill]]  ;;  %s702_s1 = sshll.u32 %s1272_s20, 4  ;;  %s703_s1 = int_to_ptr.hbm [resolvable:$true] %s702_s1 }
  0x1d   :  { %246 = vmatpush.msra.mxu2 %v155_v8  ;;  %v216_v28 = vmul.f32 2.0, %v157_v26  ;;  %v273_v55 = vld [vmem:[#allocation7 + $0x18] sm:$0xff]  ;;  %v277_v59 = vld [vmem:[%s1260_s8 + $0x18] sm:$0xff]  ;;  %v276_v60 = vld [vmem:[%s1260_s8 + $0x10] sm:$0xff]  ;;  %s1286_s28 = sld [smem:[#allocation18_spill]]  ;;  %vm691_vm3 = vcmask 59392  }
  0x1e   :  { %v275_v61 = vld [vmem:[%s1260_s8 + $0x8] sm:$0xff]  ;;  %v274_v62 = vld [vmem:[%s1260_s8] sm:$0xff]  ;;  %v380_v8 = vld [vmem:[#allocation8 + $0x10] sm:$0xff] }
  0x1f   :  { %247 = vmatpush.msra.mxu2 %v154_v10  ;;  %v218_v32 = vperm.slane %v216_v28, 0  ;;  %v381_v7 = vld [vmem:[#allocation8 + $0x18] sm:$0xff]  ;;  %v378_v10 = vld [vmem:[#allocation8] sm:$0xff] }
  0x20   :  { %v129_v0 = vld [vmem:[%s1283_s27 + $0x8] sm:$0xff]  ;;  %v128_v1 = vld [vmem:[%s1283_s27] sm:$0xff]  ;;  %v131_v3 = vld [vmem:[%s1283_s27 + $0x18] sm:$0xff] }
  0x21   :  { %178 = vmatpush.msra.mxu0 %v129_v0  ;;  %v1037_v2 = vld [vmem:[%s1284_s30] sm:$0xff]  ;;  %v130_v4 = vld [vmem:[%s1283_s27 + $0x10] sm:$0xff]  ;;  %207 = vmatpush.msra.mxu1 %v131_v3  ;;  %v1053_v6 = vld [vmem:[%s1284_s30 + $0x18] sm:$0xff] }
  0x22   :  { %751 = vmatpush.msra.mxu3 %v131_v3  ;;  %v1048_v5 = vld [vmem:[%s1284_s30 + $0x10] sm:$0xff]  ;;  %v125_v9 = vld [vmem:[%s1284_s30 + $0x8] sm:$0xff]  ;;  %248 = vmatpush.msra.mxu2 %v153_v11  ;;  %v133_v13 = vsel %vm132_vm0, %v1037_v2, 0.0  ;;  %v142_v14 = vsel %vm132_vm0, %v1053_v6, 0.0  ;;  %v278_v11 = vld [vmem:[%s1261_s9] sm:$0x1] }
  0x23   :  { %179 = vmatpush.msra.mxu0 %v128_v1  ;;  %208 = vmatpush.msra.mxu1 %v130_v4  ;;  %v136_v12 = vsel %vm132_vm0, %v125_v9, 0.0  ;;  %v139_v15 = vsel %vm132_vm0, %v1048_v5, 0.0 }
  0x24   :  { %716 = vmatmul.msk.f32.vlgmr.msra.gmra.mxu0 %vm132_vm0, %v1037_v2  ;;  %718 = vmatmul.msk.f32.vlgmr.msra.gmra.mxu1 %vm132_vm0, %v1048_v5 }
  0x25   :  { %752 = vmatpush.msra.mxu3 %v130_v4  ;;  %137 = vadd.xlane.f32.xlu0 %v136_v12  ;;  %v325_v12 = vmul.f32 2.0, %v278_v11  ;;  %v638_v11 = vld [vmem:[%s1269_s17 + $0x10] sm:$0xff] }
  0x26   :  { %719 = vmatmul.msk.f32.vlgmr.msra.gmra.mxu3 %vm132_vm0, %v1053_v6  ;;  %143 = vadd.xlane.f32.xlu1 %v142_v14  ;;  %v474_v14 = vld [vmem:[%s1285_s26 + $0x10] sm:$0xff] }
  0x27   :  { %353 = vmatpush.msrb.mxu1 %v277_v59 }
  0x29   :  { %354 = vmatpush.msrb.mxu1 %v276_v60 }
  0x2b   :  { %355 = vmatpush.msrb.mxu1 %v275_v61 }
  0x2c   :  { %717 = vmatmul.msk.f32.gmra.mxu0 %vm132_vm0, %v125_v9 }
  0x2d   :  { %134 = vadd.xlane.f32.xlu0 %v133_v13  ;;  %356 = vmatpush.msrb.mxu1 %v274_v62  ;;  %v327_v13 = vperm.slane %v325_v12, 0  ;;  %v637_v12 = vld [vmem:[%s1269_s17 + $0x8] sm:$0xff] }
  0x2e   :  { %140 = vadd.xlane.f32.xlu1 %v139_v15  ;;  %v472_v15 = vld [vmem:[%s1285_s26] sm:$0xff] }
  0x98   :  { %v138_v24 = vpop.xlane.xlu0 %137 }
  0x99   :  { %v146_v29 = vadd.f32 1.0, %v138_v24  ;;  %v144_v31 = vpop.xlane.xlu1 %143 }
  0x9a   :  { %v148_v41 = vadd.f32 1.0, %v144_v31 }
  0xa0   :  { %v135_v25 = vpop.xlane.xlu0 %134 }
  0xa1   :  { %v181_v16 = vpop.f32.mrf.mxu0  ;;  %v210_v20 = vpop.f32.mrf.mxu1  ;;  %v145_v27 = vadd.f32 1.0, %v135_v25 }
  0xa2   :  { %v182_v17 = vadd.f32 %v181_v16, %v128_v1  ;;  %v211_v21 = vadd.f32 %v210_v20, %v130_v4  ;;  %v141_v40 = vpop.xlane.xlu1 %140  ;;  %v475_v16 = vld [vmem:[%s1285_s26 + $0x18] sm:$0xff] }
  0xa3   :  { %767 = vrcp.f32 %v145_v27  ;;  %v147_v43 = vadd.f32 1.0, %v141_v40  ;;  %v506_v40 = vld [vmem:[%s1265_s13 + $0x10] sm:$0xff] }
  0xa4   :  { %720 = vmatmul.msk.f32.vlgmr.msra.gmra.mxu2 %vm220_vm1, %v182_v17  ;;  %769 = vrcp.f32 %v146_v29 }
  0xa5   :  { %771 = vrcp.f32 %v148_v41  ;;  %v505_v41 = vld [vmem:[%s1265_s13 + $0x8] sm:$0xff] }
  0xa6   :  { %773 = vrcp.f32 %v147_v43  ;;  %v500_v43 = vld [vmem:[%s1286_s28] sm:$0xff] }
  0xa9   :  { %v184_v18 = vpop.f32.mrf.mxu0  ;;  %v213_v22 = vpop.f32.mrf.mxu3 }
  0xaa   :  { %v185_v19 = vadd.f32 %v184_v18, %v129_v0  ;;  %v214_v23 = vadd.f32 %v213_v22, %v131_v3  ;;  %v1091_v34 = vpop.eup %767  ;;  %v909_v18 = vmov 0   ;;  %v473_v22 = vld [vmem:[%s1285_s26 + $0x8] sm:$0xff] }
  0xab   :  { %v1093_v37 = vpop.eup %769  ;;  %762 = vset.pattern.permute.xlu0 %v909_v18  ;;  %763 = vset.pattern.permute.xlu1 %v909_v18 }
  0xac   :  { %721 = vmatmul.msk.f32.gmra.mxu2 %vm220_vm1, %v185_v19  ;;  %v1099_v46 = vpop.eup %771  ;;  %488 = vperm.xlu0 %762, %v474_v14   ;;  %v636_v14 = vld [vmem:[%s1269_s17] sm:$0xff] }
  0xad   :  { %v1101_v48 = vpop.eup %773  ;;  %761 = vset.pattern.permute.xlu2 %v909_v18  ;;  %493 = vperm.xlu1 %763, %v475_v16   ;;  %v633_v16 = vld [vmem:[%s1268_s16 + $0x8] sm:$0xff] }
  0xae   :  { %478 = vperm.xlu2 %761, %v472_v15   ;;  %v634_v15 = vld [vmem:[%s1268_s16 + $0x10] sm:$0xff] }
  0xb4   :  { %722 = vmatmul.msk.f32.gmra.mxu2 %vm220_vm1, %v211_v21 }
  0xb6   :  { %483 = vperm.xlu2 %761, %v473_v22  }
  0xbc   :  { %723 = vmatmul.msk.f32.gmra.mxu2 %vm220_vm1, %v214_v23 }
 0x127   :  { %v250_v30 = vpop.f32.mrf.mxu2 }
 0x128   :  { %v251_v33 = vadd.f32 %v250_v30, %v218_v32 }
 0x12a   :  { %v262_v38 = vmul.f32 %v1091_v34, %v251_v33 }
 0x12c   :  { %v266_v44 = vmax.f32 %v262_v38, 0.0  ;;  %v508_v38 = vld [vmem:[%s1266_s14] sm:$0xff] }
 0x12f   :  { %v253_v35 = vpop.f32.mrf.mxu2 }
 0x130   :  { %v254_v36 = vadd.f32 %v253_v35, %v218_v32  ;;  %v511_v35 = vld [vmem:[%s1266_s14 + $0x18] sm:$0xff] }
 0x131   :  { %536 = vmatpush.msrb.mxu2 %v511_v35 }
 0x132   :  { %v263_v39 = vmul.f32 %v1093_v37, %v254_v36  ;;  %v510_v36 = vld [vmem:[%s1266_s14 + $0x10] sm:$0xff] }
 0x133   :  { %537 = vmatpush.msrb.mxu2 %v510_v36 }
 0x134   :  { %v267_v42 = vmax.f32 %v263_v39, 0.0  ;;  %v507_v39 = vld [vmem:[%s1265_s13 + $0x18] sm:$0xff] }
 0x135   :  { %577 = vmatpush.msra.mxu1 %v507_v39 }
 0x136   :  { %293 = vmatpush.msrb.mxu3 %v267_v42 }
 0x137   :  { %v256_v45 = vpop.f32.mrf.mxu2  ;;  %578 = vmatpush.msra.mxu1 %v506_v40 }
 0x138   :  { %294 = vmatpush.msrb.mxu3 %v266_v44  ;;  %v257_v47 = vadd.f32 %v256_v45, %v218_v32 }
 0x139   :  { %724 = vmatmul.msk.f32.vlgmr.msrb.gmra.mxu3 %vm132_vm0, %v1037_v2  ;;  %579 = vmatpush.msra.mxu1 %v505_v41 }
 0x13a   :  { %v264_v51 = vmul.f32 %v1101_v48, %v257_v47  ;;  %406 = vmatpush.msra.mxu3 %v381_v7  ;;  %v764_v47 = vld [vmem:[%s1264_s12] ss:$0 sm:$0xff]  ;;  %s910_s12 = smov [#allocation10]  }
 0x13b   :  { %s700_s7 = sshll.u32 %s910_s12, 4  ;;  %s701_s7 = int_to_ptr.vmem [resolvable:$true] %s700_s7 }
 0x13c   :  { %v268_v54 = vmax.f32 %v264_v51, 0.0  ;;  %407 = vmatpush.msra.mxu3 %v380_v8  ;;  %v607_v8 = vld [vmem:[#allocation2] sm:$0x7] }
 0x13f   :  { %v259_v49 = vpop.f32.mrf.mxu2 }
 0x140   :  { %v260_v50 = vadd.f32 %v259_v49, %v218_v32  ;;  %v479_v49 = vpop.permute.xlu2 %478 }
 0x141   :  { %725 = vmatmul.msk.f32.gmra.mxu3 %vm132_vm0, %v125_v9  ;;  %v379_v9 = vld [vmem:[#allocation8 + $0x8] sm:$0xff] }
 0x142   :  { %v265_v52 = vmul.f32 %v1099_v46, %v260_v50  ;;  %408 = vmatpush.msra.mxu3 %v379_v9  ;;  %v639_v9 = vld [vmem:[%s1269_s17 + $0x18] sm:$0xff] }
 0x144   :  { %v269_v53 = vmax.f32 %v265_v52, 0.0  ;;  %409 = vmatpush.msra.mxu3 %v378_v10  ;;  %v503_v52 = vld [vmem:[%s1286_s28 + $0x18] sm:$0xff] }
 0x146   :  { %316 = vmatpush.msrb.mxu0 %v269_v53 }
 0x148   :  { %317 = vmatpush.msrb.mxu0 %v268_v54 }
 0x149   :  { %726 = vmatmul.msk.f32.vlgmr.msrb.gmra.mxu0 %vm132_vm0, %v1048_v5 }
 0x14a   :  { %447 = vmatpush.msra.mxu0 %v273_v55 }
 0x14c   :  { %448 = vmatpush.msra.mxu0 %v272_v56 }
 0x14e   :  { %449 = vmatpush.msra.mxu0 %v271_v57  ;;  %v484_v57 = vpop.permute.xlu2 %483 }
 0x150   :  { %450 = vmatpush.msra.mxu0 %v270_v58 }
 0x151   :  { %727 = vmatmul.msk.f32.gmra.mxu0 %vm132_vm0, %v1053_v6 }
 0x159   :  { %736 = vmatmul.msk.f32.vlgmr.msra.gmra.mxu0 %vm220_vm1, %v266_v44 }
 0x161   :  { %737 = vmatmul.msk.f32.gmra.mxu0 %vm220_vm1, %v267_v42 }
 0x169   :  { %738 = vmatmul.msk.f32.gmra.mxu0 %vm220_vm1, %v268_v54 }
 0x171   :  { %739 = vmatmul.msk.f32.gmra.mxu0 %vm220_vm1, %v269_v53 }
 0x1bc   :  { %v296_v63 = vpop.f32.mrf.mxu3 }
 0x1bd   :  { %v297_v0 = vadd.f32 %v296_v63, %v266_v44  ;;  %v501_v44 = vld [vmem:[%s1286_s28 + $0x8] sm:$0xff]  ;;  %v489_v63 = vpop.permute.xlu0 %488 }
 0x1bf   :  { %728 = vmatmul.msk.f32.vlgmr.msrb.gmra.mxu1 %vm220_vm1, %v297_v0 }
 0x1c4   :  { %v299_v1 = vpop.f32.mrf.mxu3 }
 0x1c5   :  { %v300_v2 = vadd.f32 %v299_v1, %v267_v42  ;;  %v504_v42 = vld [vmem:[%s1265_s13] sm:$0xff] }
 0x1c6   :  { %v319_v3 = vpop.f32.mrf.mxu0  ;;  %580 = vmatpush.msra.mxu1 %v504_v42 }
 0x1c7   :  { %729 = vmatmul.msk.f32.gmra.mxu1 %vm220_vm1, %v300_v2  ;;  %v320_v4 = vadd.f32 %v319_v3, %v268_v54 }
 0x1ce   :  { %v322_v5 = vpop.f32.mrf.mxu0 }
 0x1cf   :  { %730 = vmatmul.msk.f32.gmra.mxu1 %vm220_vm1, %v320_v4  ;;  %v323_v6 = vadd.f32 %v322_v5, %v269_v53  ;;  %v494_v5 = vpop.permute.xlu1 %493 }
 0x1d6   :  { %v452_v45 = vpop.f32.mrf.mxu0 }
 0x1d7   :  { %731 = vmatmul.msk.f32.gmra.mxu1 %vm220_vm1, %v323_v6 }
 0x1de   :  { %v455_v53 = vpop.f32.mrf.mxu0 }
 0x1df   :  { %744 = vmatmul.msk.f32.vlgmr.msra.gmra.mxu1 %vm220_vm1, %v500_v43 }
 0x1e6   :  { %v458_v60 = vpop.f32.mrf.mxu0 }
 0x1e7   :  { %745 = vmatmul.msk.f32.gmra.mxu1 %vm220_vm1, %v501_v44 }
 0x1ee   :  { %v461_v2 = vpop.f32.mrf.mxu0 }
 0x23c   :  { %v358_v17 = vpop.f32.mrf.mxu1 }
 0x23d   :  { %v359_v19 = vadd.f32 %v358_v17, %v327_v13  ;;  %v765_v17 = vld [vmem:[%s1267_s15] ss:$0 sm:$0xff] }
 0x23f   :  { %v370_v20 = vmul.f32 %v1091_v34, %v359_v19  ;;  %v632_v19 = vld [vmem:[%s1268_s16] sm:$0xff] }
 0x241   :  { %v374_v21 = vmax.f32 %v370_v20, 0.0 }
 0x243   :  { %732 = vmatmul.msk.f32.vlgmr.msra.gmra.mxu3 %vm220_vm1, %v374_v21  ;;  %v631_v21 = vld [vmem:[#allocation5] sm:$0x7] }
 0x244   :  { %v361_v23 = vpop.f32.mrf.mxu1 }
 0x245   :  { %v362_v24 = vadd.f32 %v361_v23, %v327_v13 }
 0x247   :  { %v371_v25 = vmul.f32 %v1093_v37, %v362_v24  ;;  %v509_v37 = vld [vmem:[%s1266_s14 + $0x8] sm:$0xff] }
 0x248   :  { %538 = vmatpush.msrb.mxu2 %v509_v37  ;;  %v766_v37 = vld [vmem:[%s1270_s18] ss:$0 sm:$0xff] }
 0x249   :  { %v375_v26 = vmax.f32 %v371_v25, 0.0 }
 0x24a   :  { %539 = vmatpush.msrb.mxu2 %v508_v38 }
 0x24b   :  { %733 = vmatmul.msk.f32.gmra.mxu3 %vm220_vm1, %v375_v26 }
 0x24c   :  { %v364_v27 = vpop.f32.mrf.mxu1 }
 0x24d   :  { %v365_v28 = vadd.f32 %v364_v27, %v327_v13 }
 0x24f   :  { %v372_v29 = vmul.f32 %v1101_v48, %v365_v28 }
 0x251   :  { %v376_v30 = vmax.f32 %v372_v29, 0.0 }
 0x253   :  { %734 = vmatmul.msk.f32.gmra.mxu3 %vm220_vm1, %v376_v30 }
 0x254   :  { %v367_v31 = vpop.f32.mrf.mxu1 }
 0x255   :  { %v368_v32 = vadd.f32 %v367_v31, %v327_v13  ;;  %v635_v13 = vld [vmem:[%s1268_s16 + $0x18] sm:$0xff] }
 0x256   :  { %678 = vmatpush.msrb.mxu0 %v635_v13 }
 0x257   :  { %v373_v33 = vmul.f32 %v1099_v46, %v368_v32  ;;  %v502_v46 = vld [vmem:[%s1286_s28 + $0x10] sm:$0xff] }
 0x258   :  { %746 = vmatmul.msk.f32.gmra.mxu1 %vm220_vm1, %v502_v46  ;;  %679 = vmatpush.msrb.mxu0 %v634_v15 }
 0x259   :  { %v377_v34 = vmax.f32 %v373_v33, 0.0 }
 0x25a   :  { %680 = vmatpush.msrb.mxu0 %v633_v16 }
 0x25b   :  { %735 = vmatmul.msk.f32.gmra.mxu3 %vm220_vm1, %v377_v34 }
 0x25c   :  { %v582_v10 = vpop.f32.mrf.mxu1  ;;  %681 = vmatpush.msrb.mxu0 %v632_v19 }
 0x25d   :  { %750 = vmatmul.msk.f32.vlgmr.msrb.gmra.mxu0 %vm220_vm1, %v631_v21 }
 0x260   :  { %747 = vmatmul.msk.f32.gmra.mxu1 %vm220_vm1, %v503_v52 }
 0x264   :  { %v585_v22 = vpop.f32.mrf.mxu1 }
 0x2c6   :  { %v411_v48 = vpop.f32.mrf.mxu3 }
 0x2c7   :  { %v453_v50 = vadd.f32 %v452_v45, %v411_v48 }
 0x2c9   :  { %v468_v51 = vadd.f32 %v764_v47, %v453_v50 }
 0x2cb   :  { %v496_v54 = vmul.f32 %v479_v49, %v468_v51 }
 0x2cd   :  { %740 = vmatmul.msk.f32.vlgmr.msrb.gmra.mxu2 %vm220_vm1, %v496_v54 }
 0x2ce   :  { %v414_v55 = vpop.f32.mrf.mxu3 }
 0x2cf   :  { %v456_v56 = vadd.f32 %v455_v53, %v414_v55 }
 0x2d1   :  { %v469_v58 = vadd.f32 %v764_v47, %v456_v56 }
 0x2d3   :  { %v497_v59 = vmul.f32 %v484_v57, %v469_v58 }
 0x2d5   :  { %741 = vmatmul.msk.f32.gmra.mxu2 %vm220_vm1, %v497_v59  ;;  %v588_v27 = vpop.f32.mrf.mxu1 }
 0x2d6   :  { %v417_v61 = vpop.f32.mrf.mxu3 }
 0x2d7   :  { %v459_v62 = vadd.f32 %v458_v60, %v417_v61 }
 0x2d9   :  { %v470_v0 = vadd.f32 %v764_v47, %v459_v62 }
 0x2da   :  { %v683_v36 = vpop.f32.mrf.mxu0 }
 0x2db   :  { %v498_v1 = vmul.f32 %v489_v63, %v470_v0 }
 0x2dd   :  { %742 = vmatmul.msk.f32.gmra.mxu2 %vm220_vm1, %v498_v1  ;;  %v591_v31 = vpop.f32.mrf.mxu1 }
 0x2de   :  { %v420_v3 = vpop.f32.mrf.mxu3 }
 0x2df   :  { %v462_v4 = vadd.f32 %v461_v2, %v420_v3 }
 0x2e1   :  { %v471_v6 = vadd.f32 %v764_v47, %v462_v4 }
 0x2e3   :  { %v499_v7 = vmul.f32 %v494_v5, %v471_v6  ;;  %623 = vmatpush.msrb.mxu3 %v471_v6 }
 0x2e5   :  { %743 = vmatmul.msk.f32.gmra.mxu2 %vm220_vm1, %v499_v7  ;;  %624 = vmatpush.msrb.mxu3 %v470_v0 }
 0x2e7   :  { %625 = vmatpush.msrb.mxu3 %v469_v58 }
 0x2e9   :  { %626 = vmatpush.msrb.mxu3 %v468_v51 }
 0x2ea   :  { %748 = vmatmul.msk.f32.vlgmr.msrb.gmra.mxu3 %vm220_vm1, %v607_v8 }
 0x2eb   :  { %655 = vmatpush.msra.mxu3 %v639_v9 }
 0x2ed   :  { %656 = vmatpush.msra.mxu3 %v638_v11 }
 0x2ef   :  { %657 = vmatpush.msra.mxu3 %v637_v12 }
 0x2f1   :  { %658 = vmatpush.msra.mxu3 %v636_v14 }
 0x350   :  { %v541_v18 = vpop.f32.mrf.mxu2 }
 0x351   :  { %v583_v20 = vadd.f32 %v582_v10, %v541_v18 }
 0x353   :  { %v598_v23 = vadd.f32 %v765_v17, %v583_v20 }
 0x355   :  { %603 = vst.msk [vmem:[%s1271_s19] sm:$0xff] %vm602_vm2, %v598_v23 }
 0x358   :  { %v544_v24 = vpop.f32.mrf.mxu2 }
 0x359   :  { %v586_v25 = vadd.f32 %v585_v22, %v544_v24 }
 0x35b   :  { %v599_v26 = vadd.f32 %v765_v17, %v586_v25 }
 0x35d   :  { %604 = vst.msk [vmem:[%s1271_s19 + $0x8] sm:$0xff] %vm602_vm2, %v599_v26 }
 0x360   :  { %v547_v28 = vpop.f32.mrf.mxu2 }
 0x361   :  { %v589_v29 = vadd.f32 %v588_v27, %v547_v28 }
 0x363   :  { %v600_v30 = vadd.f32 %v765_v17, %v589_v29 }
 0x365   :  { %605 = vst.msk [vmem:[%s1271_s19 + $0x10] sm:$0xff] %vm602_vm2, %v600_v30 }
 0x368   :  { %v550_v32 = vpop.f32.mrf.mxu2 }
 0x369   :  { %v592_v33 = vadd.f32 %v591_v31, %v550_v32 }
 0x36b   :  { %v601_v34 = vadd.f32 %v765_v17, %v592_v33 }
 0x36d   :  { %606 = vst.msk [vmem:[%s1271_s19 + $0x18] sm:$0xff] %vm602_vm2, %v601_v34  ;;  %v628_v35 = vpop.f32.mrf.mxu3 }
 0x36e   :  { %749 = vmatmul.msk.f32.vlgmr.msra.gmra.mxu3 %vm220_vm1, %v628_v35 }
 0x3f1   :  { %v660_v38 = vpop.f32.mrf.mxu3 }
 0x3f2   :  { %v684_v39 = vadd.f32 %v683_v36, %v660_v38 }
 0x3f4   :  { %v690_v40 = vadd.f32 %v766_v37, %v684_v39 }
 0x3f6   :  { %692 = vst.msk [vmem:[#allocation10] sm:$0x7] %vm691_vm3, %v690_v40 }
 0x3f7   :  { %705 = dma.vmem_to_hbm [thread:$0]  %s701_s7, 64, %s703_s1, [#allocation4]  }
 0x3f8   :  { %901 = dma.done.wait [#allocation4], 64  }
 0x3f9   :  { %902 = vsyncadd [#allocation4], 4294967232 }
 0x3fa   :  { %712 = vsyncpa [#allocation3], 1 }
 0x3fb   :  { %713 = vsyncpa [#allocation6], 1 }
 0x3fc   :  { %714 = vsyncpa [#allocation9], 1 }
 0x3fd   :  { %715 = vsyncpa [#allocation4], 1 }

</bundles_post_ra>
